<compile_context>
chip_gen: v5e
topology: v5e:2x2
jax: 0.10.0
libtpu: 0.0.40
codegen_flags: <defaults>
</compile_context>

<pallas_src>
import jax
import jax.numpy as jnp
from jax.experimental import pallas as pl
from jax.experimental.pallas import tpu as pltpu


def linear_kernel(x_ref, wt_ref, b_ref, o_ref):
    # x: (B, F_in), wt: (F_in, F_out) [already transposed], b: (1, F_out)
    x = x_ref[...]
    wt = wt_ref[...]
    b = b_ref[...]
    y = jnp.dot(x, wt, preferred_element_type=jnp.float32) + b
    o_ref[...] = y.astype(o_ref.dtype)


def linear_pallas(x, w, b):
    """x: (B, F_in); w: (F_out, F_in) torch-layout; b: (F_out,)."""
    B, F_in = x.shape
    F_out = w.shape[0]
    wt = w.T                      # hoisted transpose: folded/fused by XLA, not in-kernel
    b2d = b.reshape(1, F_out)
    vmem_spec = pl.BlockSpec(memory_space=pltpu.MemorySpace.VMEM)
    return pl.pallas_call(
        linear_kernel,
        out_shape=jax.ShapeDtypeStruct((B, F_out), x.dtype),
        in_specs=[vmem_spec, vmem_spec, vmem_spec],
        out_specs=vmem_spec,
    )(x, wt, b2d)


# TODO(synk): if batch B ever grows large, switch to grid=(cdiv(B, 256),) tiling over
# batch with dimension_semantics=("parallel",) so v7x can shard across its 2 TCs.
linear_pallas_jit = jax.jit(linear_pallas)


if __name__ == "__main__":
    key = jax.random.PRNGKey(0)
    kx, kw, kb = jax.random.split(key, 3)

    B, F_in, F_out = 8, 10, 10
    x = jax.random.normal(kx, (B, F_in), dtype=jnp.float32)
    # Deterministic parameter init (mimics nn.Linear uniform(-1/sqrt(10), 1/sqrt(10)))
    bound = 1.0 / jnp.sqrt(jnp.float32(F_in))
    w = jax.random.uniform(kw, (F_out, F_in), dtype=jnp.float32, minval=-bound, maxval=bound)
    b = jax.random.uniform(kb, (F_out,), dtype=jnp.float32, minval=-bound, maxval=bound)

    y = linear_pallas_jit(x, w, b)
    jax.block_until_ready(y)

    # Reference check against plain JAX
    y_ref = x @ w.T + b
    assert jnp.allclose(y, y_ref, atol=1e-5, rtol=1e-5), "mismatch vs reference"
    print("KERNEL_OK")
</pallas_src>

<mosaic_0001>
module attributes {stable_mosaic.version = 11 : i64} {
  func.func @linear_kernel(%arg0: memref<8x10xf32, #tpu.memory_space<vmem>>, %arg1: memref<10x10xf32, #tpu.memory_space<vmem>>, %arg2: memref<1x10xf32, #tpu.memory_space<vmem>>, %arg3: memref<8x10xf32, #tpu.memory_space<vmem>>) attributes {dimension_semantics = [], scalar_prefetch = 0 : i64, scratch_operands = 0 : i64, tpu.core_type = #tpu.core_type<tc>} {
    %c0 = arith.constant 0 : index
    %c0_0 = arith.constant 0 : index
    %0 = vector.load %arg0[%c0, %c0_0] : memref<8x10xf32, #tpu.memory_space<vmem>>, vector<8x10xf32>
    %c0_1 = arith.constant 0 : index
    %c0_2 = arith.constant 0 : index
    %1 = vector.load %arg1[%c0_1, %c0_2] : memref<10x10xf32, #tpu.memory_space<vmem>>, vector<10x10xf32>
    %c0_3 = arith.constant 0 : index
    %c0_4 = arith.constant 0 : index
    %2 = vector.load %arg2[%c0_3, %c0_4] : memref<1x10xf32, #tpu.memory_space<vmem>>, vector<1x10xf32>
    %cst = arith.constant dense<0.000000e+00> : vector<8x10xf32>
    %3 = tpu.matmul %0, %1, %cst {dimension_numbers = #tpu.dot_dimension_numbers<[1], [0], [0], [1], [0, 0, 1, 1], [], []>} : vector<8x10xf32>, vector<10x10xf32>, vector<8x10xf32> -> vector<8x10xf32>
    %4 = vector.broadcast %2 : vector<1x10xf32> to vector<8x10xf32>
    %5 = arith.addf %3, %4 : vector<8x10xf32>
    %c0_5 = arith.constant 0 : index
    %c0_6 = arith.constant 0 : index
    %6 = vector.load %arg3[%c0_5, %c0_6] : memref<8x10xf32, #tpu.memory_space<vmem>>, vector<8x10xf32>
    tpu.vector_store %arg3[%c0_5, %c0_6], %5 {strides = array<i32>} : memref<8x10xf32, #tpu.memory_space<vmem>>, vector<8x10xf32>,
    return
  }
}

</mosaic_0001>

<bundles_post_ra>
// kernel: linear_pallas.1
= control target key start
LH: loop header
LB: loop body
LE: loop exit
PB: predicated region body
PF: predicated region fallthrough
CT: control target
= control target key end

     0   :  { %vm26_vm0 = vcmask 1041408   ;;  %vm22_vm1 = vcmask 80896   ;;  %s133_s0 = inlined_call_operand.vmem [shape: f32[8,10], index: 0, kind: input, shape index: {}]   ;;  %s134_s1 = inlined_call_operand.vmem [shape: f32[10,10], index: 1, kind: input, shape index: {}]   ;;  %s135_s2 = inlined_call_operand.vmem [shape: f32[1,10], index: 2, kind: input, shape index: {}]   ;;  %s136_s3 = inlined_call_operand.hbm [shape: f32[8,10], index: 3, kind: output, shape index: {}]  }
   0x1   :  { %v17_v0 = vld [vmem:[%s134_s1 + $0x8] sm:$0x3]  ;;  %v16_v1 = vld [vmem:[%s134_s1] sm:$0xff] }
   0x2   :  { %67 = vmatpush.msk.msra.mxu0 %vm26_vm0, %v17_v0  ;;  %v15_v2 = vld [vmem:[%s133_s0] sm:$0xff] }
   0x3   :  { %8 = vsyncpa [#allocation3], 0  ;;  %v70_v3 = vld [vmem:[%s135_s2] ss:$0 sm:$0xff]  ;;  %s97_s20 = smov [#allocation2]   ;;  %s58_s24 = sshll.u32 %s136_s3, 4  ;;  %s59_s24 = int_to_ptr.hbm [resolvable:$true] %s58_s24 }
   0x4   :  { %45 = vmatpush.msra.mxu0 %v16_v1  ;;  %s56_s21 = sshll.u32 %s97_s20, 4  ;;  %s57_s21 = int_to_ptr.vmem [resolvable:$true] %s56_s21 }
   0x5   :  { %68 = vmatmul.msk.f32.vlgmr.msra.gmra.mxu0 %vm22_vm1, %v15_v2 }
  0x82   :  { %v47_v4 = vpop.f32.mrf.mxu0 }
  0x83   :  { %v48_v5 = vadd.f32 %v70_v3, %v47_v4 }
  0x85   :  { %50 = vst.msk [vmem:[#allocation2] sm:$0xff] %vm22_vm1, %v48_v5 }
  0x86   :  { %61 = dma.vmem_to_hbm [thread:$0]  %s57_s21, 128, %s59_s24, [#allocation3]  }
  0x87   :  { %95 = dma.done.wait [#allocation3], 128  }
  0x88   :  { %96 = vsyncadd [#allocation3], 4294967168 }
  0x89   :  { %66 = vsyncpa [#allocation3], 1 }

</bundles_post_ra>
